<compile_context>
chip_gen: v5e
topology: v5e:2x2
jax: 0.10.0
libtpu: 0.0.40
codegen_flags: <defaults>
</compile_context>

<pallas_src>
import jax
import jax.numpy as jnp
import numpy as np
from jax import lax
from jax.experimental import pallas as pl
from jax.experimental.pallas import tpu as pltpu


# -----------------------------------------------------------------------------
# Fused ConvBlock
# -----------------------------------------------------------------------------
def conv_block(x_nchw, weight_oihw, bias, gamma, beta, eps=1e-5):
    """Forward pass of ConvBlock. x_nchw: (N, Cin, H, W) float32 -> (N, Cout, H, W)."""
    N, Cin, H, W = map(int, x_nchw.shape)
    Cout = int(weight_oihw.shape[0])
    OW = W * Cout            # lane-dense output row width   (16*8  = 128)
    KW = (W + 2) * Cin       # lane-dense padded input row    (18*4 = 72)
    inv_cnt = 1.0 / float(N * H * W)

    # ---- wrapper-side glue (tiny, one-time) ---------------------------------
    # NCHW -> NHWC, pad H/W by 1, flatten each padded row to (W+2)*Cin lanes.
    x = jnp.transpose(x_nchw, (0, 2, 3, 1)).astype(jnp.float32)
    x_pad = jnp.pad(x, ((0, 0), (1, 1), (1, 1), (0, 0)))
    x_rows = x_pad.reshape(N, H + 2, KW)

    # Banded im2row weights: one ((W+2)*Cin, W*Cout) matrix per kh so the whole
    # 3x3 conv is 3 lane-dense matmuls.
    #   m[kh, (wo+kw)*Cin + ci, wo*Cout + co] = weight[co, ci, kh, kw]
    w_hwio = jnp.transpose(weight_oihw, (2, 3, 1, 0)).astype(jnp.float32)   # (3,3,Cin,Cout)
    kw_idx = jnp.arange(W + 2)[:, None] - jnp.arange(W)[None, :]            # wi - wo
    valid = ((kw_idx >= 0) & (kw_idx <= 2)).astype(jnp.float32)             # (W+2, W)
    m5 = w_hwio[:, jnp.clip(kw_idx, 0, 2)]                                  # (3, W+2, W, Cin, Cout)
    m5 = m5 * valid[None, :, :, None, None]
    m = jnp.transpose(m5, (0, 1, 3, 2, 4)).reshape(3, KW, OW)               # (3, KW, OW)

    # Channel-tiled (per-lane) bias / gamma / beta: lane w*Cout+co -> channel co.
    b_d = jnp.tile(bias.astype(jnp.float32), W).reshape(1, OW)
    g_d = jnp.tile(gamma.astype(jnp.float32), W).reshape(1, OW)
    beta_d = jnp.tile(beta.astype(jnp.float32), W).reshape(1, OW)

    # ---- fused kernel: single step ------------------------------------------
    def kernel(x_ref, w_ref, b_ref, g_ref, bt_ref, out_ref):
        # 3x3 conv as 3 banded matmuls over the whole batch:
        #   (N*H, (W+2)*Cin) @ ((W+2)*Cin, W*Cout)
        # TODO(synk): the kh=1,2 slices start mid (8,128) sublane tile; at scale
        # replace them with a full (H+2)-row matmul + pltpu.roll on the sublane
        # axis (+ halo-row mask) to avoid the shifted-copy relayouts.
        acc = jnp.zeros((N * H, OW), jnp.float32)
        for kh in range(3):
            xk = jnp.concatenate(
                [x_ref[n, kh:kh + H, :] for n in range(N)], axis=0)         # (N*H, KW)
            acc = acc + jnp.dot(xk, w_ref[kh],
                                preferred_element_type=jnp.float32)
        conv = acc + b_ref[...]                                             # (N*H, OW)

        # Channel-reduction matrix (tiled identity) built in-kernel:
        # R[row, col] = 1 iff (row % Cout) == (col % Cout).
        row_c = lax.broadcasted_iota(jnp.int32, (OW, OW), 0) % Cout
        col_c = lax.broadcasted_iota(jnp.int32, (OW, OW), 1) % Cout
        red = (row_c == col_c).astype(jnp.float32)                          # (OW, OW)

        # Two-pass training-mode batch statistics (biased variance).
        lane_sum = jnp.sum(conv, axis=0, keepdims=True)                     # (1, OW)
        mean = jnp.dot(lane_sum, red,
                       preferred_element_type=jnp.float32) * inv_cnt        # per-channel, per lane
        centered = conv - mean
        lane_ss = jnp.sum(centered * centered, axis=0, keepdims=True)       # (1, OW)
        var = jnp.dot(lane_ss, red,
                      preferred_element_type=jnp.float32) * inv_cnt

        scale = g_ref[...] * lax.rsqrt(var + eps)
        y = centered * scale + bt_ref[...]
        out_ref[...] = jnp.maximum(y, 0.0)                                  # lane-dense store

    out = pl.pallas_call(
        kernel,
        out_shape=jax.ShapeDtypeStruct((N * H, OW), jnp.float32),
        grid_spec=pltpu.PrefetchScalarGridSpec(
            num_scalar_prefetch=0,
            grid=(1,),
            in_specs=[
                pl.BlockSpec((N, H + 2, KW), lambda i: (0, 0, 0)),
                pl.BlockSpec((3, KW, OW), lambda i: (0, 0, 0)),
                pl.BlockSpec((1, OW), lambda i: (0, 0)),
                pl.BlockSpec((1, OW), lambda i: (0, 0)),
                pl.BlockSpec((1, OW), lambda i: (0, 0)),
            ],
            out_specs=pl.BlockSpec((N * H, OW), lambda i: (0, 0)),
        ),
        compiler_params=pltpu.CompilerParams(
            dimension_semantics=("arbitrary",)),
    )(x_rows, m, b_d, g_d, beta_d)

    # lane-dense (N*H, W*Cout) -> NCHW (PyTorch convention)
    return jnp.transpose(out.reshape(N, H, W, Cout), (0, 3, 1, 2))


# -----------------------------------------------------------------------------
# Pure-JAX reference (correctness sanity check)
# -----------------------------------------------------------------------------
def conv_block_ref(x_nchw, weight_oihw, bias, gamma, beta, eps=1e-5):
    y = lax.conv_general_dilated(
        x_nchw, weight_oihw, window_strides=(1, 1), padding="SAME",
        dimension_numbers=("NCHW", "OIHW", "NCHW"))
    y = y + bias[None, :, None, None]
    mean = jnp.mean(y, axis=(0, 2, 3))
    var = jnp.mean((y - mean[None, :, None, None]) ** 2, axis=(0, 2, 3))
    yn = (y - mean[None, :, None, None]) / jnp.sqrt(var[None, :, None, None] + eps)
    yn = yn * gamma[None, :, None, None] + beta[None, :, None, None]
    return jnp.maximum(yn, 0.0)


if __name__ == "__main__":
    # ConvBlock(input_channels=4, num_filters=8) on a (2, 4, 16, 16) input.
    N, Cin, H, W, Cout = 2, 4, 16, 16, 8

    key = jax.random.PRNGKey(0)
    kx, kw, kb, kg, kbeta = jax.random.split(key, 5)

    x = jax.random.normal(kx, (N, Cin, H, W), dtype=jnp.float32)
    weight = jax.random.normal(kw, (Cout, Cin, 3, 3), dtype=jnp.float32) * 0.1
    bias = jax.random.normal(kb, (Cout,), dtype=jnp.float32) * 0.1
    gamma = 1.0 + 0.1 * jax.random.normal(kg, (Cout,), dtype=jnp.float32)
    beta = 0.1 * jax.random.normal(kbeta, (Cout,), dtype=jnp.float32)

    out = jax.block_until_ready(conv_block(x, weight, bias, gamma, beta))
    ref = jax.block_until_ready(conv_block_ref(x, weight, bias, gamma, beta))
    np.testing.assert_allclose(np.asarray(out), np.asarray(ref),
                               rtol=1e-4, atol=1e-4)

    print("KERNEL_OK")
</pallas_src>

<mosaic_0001>
module attributes {stable_mosaic.version = 11 : i64} {
  func.func @kernel(%arg0: i32, %arg1: memref<2x18x72xf32, #tpu.memory_space<vmem>>, %arg2: memref<3x72x128xf32, #tpu.memory_space<vmem>>, %arg3: memref<1x128xf32, #tpu.memory_space<vmem>>, %arg4: memref<1x128xf32, #tpu.memory_space<vmem>>, %arg5: memref<1x128xf32, #tpu.memory_space<vmem>>, %arg6: memref<32x128xf32, #tpu.memory_space<vmem>>) attributes {dimension_semantics = [#tpu.dimension_semantics<arbitrary>], iteration_bounds = array<i64: 1>, scalar_prefetch = 0 : i64, scratch_operands = 0 : i64, tpu.core_type = #tpu.core_type<tc>, window_params = [{pipeline_mode = #tpu.pipeline_mode<synchronous>, transform_indices = @transform_0, window_bounds = array<i64: 2, 18, 72>}, {pipeline_mode = #tpu.pipeline_mode<synchronous>, transform_indices = @transform_1, window_bounds = array<i64: 3, 72, 128>}, {pipeline_mode = #tpu.pipeline_mode<synchronous>, transform_indices = @transform_2, window_bounds = array<i64: 1, 128>}, {pipeline_mode = #tpu.pipeline_mode<synchronous>, transform_indices = @transform_3, window_bounds = array<i64: 1, 128>}, {pipeline_mode = #tpu.pipeline_mode<synchronous>, transform_indices = @transform_4, window_bounds = array<i64: 1, 128>}, {pipeline_mode = #tpu.pipeline_mode<synchronous>, transform_indices = @transform_5, window_bounds = array<i64: 32, 128>}]} {
    %cst = arith.constant 0.000000e+00 : f32
    %0 = vector.broadcast %cst : f32 to vector<32x128xf32>
    %c0 = arith.constant 0 : index
    %c0_0 = arith.constant 0 : index
    %c0_1 = arith.constant 0 : index
    %1 = vector.load %arg1[%c0, %c0_0, %c0_1] : memref<2x18x72xf32, #tpu.memory_space<vmem>>, vector<1x16x72xf32>
    %2 = vector.shape_cast %1 : vector<1x16x72xf32> to vector<16x72xf32>
    %c1 = arith.constant 1 : index
    %c0_2 = arith.constant 0 : index
    %c0_3 = arith.constant 0 : index
    %3 = vector.load %arg1[%c1, %c0_2, %c0_3] : memref<2x18x72xf32, #tpu.memory_space<vmem>>, vector<1x16x72xf32>
    %4 = vector.shape_cast %3 : vector<1x16x72xf32> to vector<16x72xf32>
    %5 = tpu.concatenate %2, %4 in 0 : vector<16x72xf32>, vector<16x72xf32> -> vector<32x72xf32>
    %c0_4 = arith.constant 0 : index
    %c0_5 = arith.constant 0 : index
    %c0_6 = arith.constant 0 : index
    %6 = vector.load %arg2[%c0_4, %c0_5, %c0_6] : memref<3x72x128xf32, #tpu.memory_space<vmem>>, vector<1x72x128xf32>
    %7 = vector.shape_cast %6 : vector<1x72x128xf32> to vector<72x128xf32>
    %cst_7 = arith.constant dense<0.000000e+00> : vector<32x128xf32>
    %8 = tpu.matmul %5, %7, %cst_7 {dimension_numbers = #tpu.dot_dimension_numbers<[1], [0], [0], [1], [0, 0, 1, 1], [], []>} : vector<32x72xf32>, vector<72x128xf32>, vector<32x128xf32> -> vector<32x128xf32>
    %9 = arith.addf %0, %8 : vector<32x128xf32>
    %c0_8 = arith.constant 0 : index
    %c1_9 = arith.constant 1 : index
    %c0_10 = arith.constant 0 : index
    %10 = vector.load %arg1[%c0_8, %c1_9, %c0_10] : memref<2x18x72xf32, #tpu.memory_space<vmem>>, vector<1x16x72xf32>
    %11 = vector.shape_cast %10 : vector<1x16x72xf32> to vector<16x72xf32>
    %c1_11 = arith.constant 1 : index
    %c1_12 = arith.constant 1 : index
    %c0_13 = arith.constant 0 : index
    %12 = vector.load %arg1[%c1_11, %c1_12, %c0_13] : memref<2x18x72xf32, #tpu.memory_space<vmem>>, vector<1x16x72xf32>
    %13 = vector.shape_cast %12 : vector<1x16x72xf32> to vector<16x72xf32>
    %14 = tpu.concatenate %11, %13 in 0 : vector<16x72xf32>, vector<16x72xf32> -> vector<32x72xf32>
    %c1_14 = arith.constant 1 : index
    %c0_15 = arith.constant 0 : index
    %c0_16 = arith.constant 0 : index
    %15 = vector.load %arg2[%c1_14, %c0_15, %c0_16] : memref<3x72x128xf32, #tpu.memory_space<vmem>>, vector<1x72x128xf32>
    %16 = vector.shape_cast %15 : vector<1x72x128xf32> to vector<72x128xf32>
    %cst_17 = arith.constant dense<0.000000e+00> : vector<32x128xf32>
    %17 = tpu.matmul %14, %16, %cst_17 {dimension_numbers = #tpu.dot_dimension_numbers<[1], [0], [0], [1], [0, 0, 1, 1], [], []>} : vector<32x72xf32>, vector<72x128xf32>, vector<32x128xf32> -> vector<32x128xf32>
    %18 = arith.addf %9, %17 : vector<32x128xf32>
    %c0_18 = arith.constant 0 : index
    %c2 = arith.constant 2 : index
    %c0_19 = arith.constant 0 : index
    %19 = vector.load %arg1[%c0_18, %c2, %c0_19] : memref<2x18x72xf32, #tpu.memory_space<vmem>>, vector<1x16x72xf32>
    %20 = vector.shape_cast %19 : vector<1x16x72xf32> to vector<16x72xf32>
    %c1_20 = arith.constant 1 : index
    %c2_21 = arith.constant 2 : index
    %c0_22 = arith.constant 0 : index
    %21 = vector.load %arg1[%c1_20, %c2_21, %c0_22] : memref<2x18x72xf32, #tpu.memory_space<vmem>>, vector<1x16x72xf32>
    %22 = vector.shape_cast %21 : vector<1x16x72xf32> to vector<16x72xf32>
    %23 = tpu.concatenate %20, %22 in 0 : vector<16x72xf32>, vector<16x72xf32> -> vector<32x72xf32>
    %c2_23 = arith.constant 2 : index
    %c0_24 = arith.constant 0 : index
    %c0_25 = arith.constant 0 : index
    %24 = vector.load %arg2[%c2_23, %c0_24, %c0_25] : memref<3x72x128xf32, #tpu.memory_space<vmem>>, vector<1x72x128xf32>
    %25 = vector.shape_cast %24 : vector<1x72x128xf32> to vector<72x128xf32>
    %cst_26 = arith.constant dense<0.000000e+00> : vector<32x128xf32>
    %26 = tpu.matmul %23, %25, %cst_26 {dimension_numbers = #tpu.dot_dimension_numbers<[1], [0], [0], [1], [0, 0, 1, 1], [], []>} : vector<32x72xf32>, vector<72x128xf32>, vector<32x128xf32> -> vector<32x128xf32>
    %27 = arith.addf %18, %26 : vector<32x128xf32>
    %c0_27 = arith.constant 0 : index
    %c0_28 = arith.constant 0 : index
    %28 = vector.load %arg3[%c0_27, %c0_28] : memref<1x128xf32, #tpu.memory_space<vmem>>, vector<1x128xf32>
    %29 = vector.broadcast %28 : vector<1x128xf32> to vector<32x128xf32>
    %30 = arith.addf %27, %29 : vector<32x128xf32>
    %31 = tpu.iota {dimensions = array<i32: 0>} : vector<128x128xi32>
    %c8_i32 = arith.constant 8 : i32
    %c0_i32 = arith.constant 0 : i32
    %32 = arith.cmpi eq, %c8_i32, %c0_i32 : i32
    %c1_i32 = arith.constant 1 : i32
    %33 = arith.select %32, %c1_i32, %c8_i32 : i32
    %34 = vector.broadcast %33 : i32 to vector<128x128xi32>
    %35 = arith.remsi %31, %34 : vector<128x128xi32>
    %c0_i32_29 = arith.constant 0 : i32
    %36 = vector.broadcast %c0_i32_29 : i32 to vector<128x128xi32>
    %37 = arith.cmpi ne, %35, %36 : vector<128x128xi32>
    %c0_i32_30 = arith.constant 0 : i32
    %38 = vector.broadcast %c0_i32_30 : i32 to vector<128x128xi32>
    %39 = arith.cmpi slt, %35, %38 : vector<128x128xi32>
    %c0_i32_31 = arith.constant 0 : i32
    %40 = arith.cmpi slt, %33, %c0_i32_31 : i32
    %41 = vector.broadcast %40 : i1 to vector<128x128xi1>
    %42 = vector.broadcast %41 : vector<128x128xi1> to vector<128x128xi1>
    %43 = arith.xori %39, %42 : vector<128x128xi1>
    %44 = arith.andi %43, %37 : vector<128x128xi1>
    %45 = vector.broadcast %33 : i32 to vector<128x128xi32>
    %46 = arith.addi %35, %45 : vector<128x128xi32>
    %47 = arith.select %44, %46, %35 : vector<128x128xi1>, vector<128x128xi32>
    %48 = tpu.iota {dimensions = array<i32: 1>} : vector<128x128xi32>
    %c8_i32_32 = arith.constant 8 : i32
    %c0_i32_33 = arith.constant 0 : i32
    %49 = arith.cmpi eq, %c8_i32_32, %c0_i32_33 : i32
    %c1_i32_34 = arith.constant 1 : i32
    %50 = arith.select %49, %c1_i32_34, %c8_i32_32 : i32
    %51 = vector.broadcast %50 : i32 to vector<128x128xi32>
    %52 = arith.remsi %48, %51 : vector<128x128xi32>
    %c0_i32_35 = arith.constant 0 : i32
    %53 = vector.broadcast %c0_i32_35 : i32 to vector<128x128xi32>
    %54 = arith.cmpi ne, %52, %53 : vector<128x128xi32>
    %c0_i32_36 = arith.constant 0 : i32
    %55 = vector.broadcast %c0_i32_36 : i32 to vector<128x128xi32>
    %56 = arith.cmpi slt, %52, %55 : vector<128x128xi32>
    %c0_i32_37 = arith.constant 0 : i32
    %57 = arith.cmpi slt, %50, %c0_i32_37 : i32
    %58 = vector.broadcast %57 : i1 to vector<128x128xi1>
    %59 = vector.broadcast %58 : vector<128x128xi1> to vector<128x128xi1>
    %60 = arith.xori %56, %59 : vector<128x128xi1>
    %61 = arith.andi %60, %54 : vector<128x128xi1>
    %62 = vector.broadcast %50 : i32 to vector<128x128xi32>
    %63 = arith.addi %52, %62 : vector<128x128xi32>
    %64 = arith.select %61, %63, %52 : vector<128x128xi1>, vector<128x128xi32>
    %65 = arith.cmpi eq, %47, %64 : vector<128x128xi32>
    %66 = arith.extui %65 : vector<128x128xi1> to vector<128x128xi32>
    %67 = arith.sitofp %66 : vector<128x128xi32> to vector<128x128xf32>
    %cst_38 = arith.constant dense<0.000000e+00> : vector<128xf32>
    %68 = vector.multi_reduction <add>, %30, %cst_38 [0] : vector<32x128xf32> to vector<128xf32>
    %69 = vector.shape_cast %68 : vector<128xf32> to vector<1x128xf32>
    %cst_39 = arith.constant dense<0.000000e+00> : vector<1x128xf32>
    %70 = tpu.matmul %69, %67, %cst_39 {dimension_numbers = #tpu.dot_dimension_numbers<[1], [0], [0], [1], [0, 0, 1, 1], [], []>} : vector<1x128xf32>, vector<128x128xf32>, vector<1x128xf32> -> vector<1x128xf32>
    %cst_40 = arith.constant 0.001953125 : f32
    %71 = vector.broadcast %cst_40 : f32 to vector<1x128xf32>
    %72 = arith.mulf %70, %71 : vector<1x128xf32>
    %73 = vector.broadcast %72 : vector<1x128xf32> to vector<32x128xf32>
    %74 = arith.subf %30, %73 : vector<32x128xf32>
    %75 = arith.mulf %74, %74 : vector<32x128xf32>
    %cst_41 = arith.constant dense<0.000000e+00> : vector<128xf32>
    %76 = vector.multi_reduction <add>, %75, %cst_41 [0] : vector<32x128xf32> to vector<128xf32>
    %77 = vector.shape_cast %76 : vector<128xf32> to vector<1x128xf32>
    %cst_42 = arith.constant dense<0.000000e+00> : vector<1x128xf32>
    %78 = tpu.matmul %77, %67, %cst_42 {dimension_numbers = #tpu.dot_dimension_numbers<[1], [0], [0], [1], [0, 0, 1, 1], [], []>} : vector<1x128xf32>, vector<128x128xf32>, vector<1x128xf32> -> vector<1x128xf32>
    %cst_43 = arith.constant 0.001953125 : f32
    %79 = vector.broadcast %cst_43 : f32 to vector<1x128xf32>
    %80 = arith.mulf %78, %79 : vector<1x128xf32>
    %c0_44 = arith.constant 0 : index
    %c0_45 = arith.constant 0 : index
    %81 = vector.load %arg4[%c0_44, %c0_45] : memref<1x128xf32, #tpu.memory_space<vmem>>, vector<1x128xf32>
    %cst_46 = arith.constant 9.99999974E-6 : f32
    %82 = vector.broadcast %cst_46 : f32 to vector<1x128xf32>
    %83 = arith.addf %80, %82 : vector<1x128xf32>
    %84 = math.rsqrt %83 : vector<1x128xf32>
    %85 = arith.mulf %81, %84 : vector<1x128xf32>
    %86 = vector.broadcast %85 : vector<1x128xf32> to vector<32x128xf32>
    %87 = arith.mulf %74, %86 : vector<32x128xf32>
    %c0_47 = arith.constant 0 : index
    %c0_48 = arith.constant 0 : index
    %88 = vector.load %arg5[%c0_47, %c0_48] : memref<1x128xf32, #tpu.memory_space<vmem>>, vector<1x128xf32>
    %89 = vector.broadcast %88 : vector<1x128xf32> to vector<32x128xf32>
    %90 = arith.addf %87, %89 : vector<32x128xf32>
    %cst_49 = arith.constant 0.000000e+00 : f32
    %91 = vector.broadcast %cst_49 : f32 to vector<32x128xf32>
    %92 = arith.maximumf %90, %91 : vector<32x128xf32>
    %c0_50 = arith.constant 0 : index
    %c0_51 = arith.constant 0 : index
    %93 = vector.load %arg6[%c0_50, %c0_51] : memref<32x128xf32, #tpu.memory_space<vmem>>, vector<32x128xf32>
    tpu.vector_store %arg6[%c0_50, %c0_51], %92 {strides = array<i32>} : memref<32x128xf32, #tpu.memory_space<vmem>>, vector<32x128xf32>,
    return
  }
  func.func @transform_0(%arg0: i32) -> (i32, i32, i32) {
    %c0_i32 = arith.constant 0 : i32
    %c0_i32_0 = arith.constant 0 : i32
    %c0_i32_1 = arith.constant 0 : i32
    %c0_i32_2 = arith.constant 0 : i32
    return %c0_i32, %c0_i32_0, %c0_i32_1 : i32, i32, i32
  }
  func.func @transform_1(%arg0: i32) -> (i32, i32, i32) {
    %c0_i32 = arith.constant 0 : i32
    %c0_i32_0 = arith.constant 0 : i32
    %c0_i32_1 = arith.constant 0 : i32
    %c0_i32_2 = arith.constant 0 : i32
    return %c0_i32, %c0_i32_0, %c0_i32_1 : i32, i32, i32
  }
  func.func @transform_2(%arg0: i32) -> (i32, i32) {
    %c0_i32 = arith.constant 0 : i32
    %c0_i32_0 = arith.constant 0 : i32
    %c0_i32_1 = arith.constant 0 : i32
    return %c0_i32, %c0_i32_0 : i32, i32
  }
  func.func @transform_3(%arg0: i32) -> (i32, i32) {
    %c0_i32 = arith.constant 0 : i32
    %c0_i32_0 = arith.constant 0 : i32
    %c0_i32_1 = arith.constant 0 : i32
    return %c0_i32, %c0_i32_0 : i32, i32
  }
  func.func @transform_4(%arg0: i32) -> (i32, i32) {
    %c0_i32 = arith.constant 0 : i32
    %c0_i32_0 = arith.constant 0 : i32
    %c0_i32_1 = arith.constant 0 : i32
    return %c0_i32, %c0_i32_0 : i32, i32
  }
  func.func @transform_5(%arg0: i32) -> (i32, i32) {
    %c0_i32 = arith.constant 0 : i32
    %c0_i32_0 = arith.constant 0 : i32
    %c0_i32_1 = arith.constant 0 : i32
    return %c0_i32, %c0_i32_0 : i32, i32
  }
}

</mosaic_0001>

<bundles_post_ra>
// kernel: tpu_custom_call.1
= control target key start
LH: loop header
LB: loop body
LE: loop exit
PB: predicated region body
PF: predicated region fallthrough
CT: control target
= control target key end

     0   :  { %10 = vsyncpa [#allocation3], 0  ;;  %s909_s0 = inlined_call_operand.vmem [shape: f32[2,18,72], index: 0, kind: input, shape index: {}]   ;;  %s910_s1 = inlined_call_operand.hbm [shape: f32[3,72,128], index: 1, kind: input, shape index: {}]   ;;  %s911_s2 = inlined_call_operand.vmem [shape: f32[1,128], index: 2, kind: input, shape index: {}]   ;;  %s912_s3 = inlined_call_operand.vmem [shape: f32[1,128], index: 3, kind: input, shape index: {}]   ;;  %s913_s4 = inlined_call_operand.vmem [shape: f32[1,128], index: 4, kind: input, shape index: {}]   ;;  %s914_s5 = inlined_call_operand.hbm [shape: f32[32,128], index: 5, kind: output, shape index: {}]  }
   0x1   :  { %11 = vsyncpa [#allocation4], 0  ;;  %s18_s20 = sshll.u32 %s910_s1, 4  ;;  %s737_s21 = smov [#allocation2]   ;;  %s19_s20 = int_to_ptr.hbm [resolvable:$true] %s18_s20 }
   0x2   :  { %s20_s22 = sshll.u32 %s737_s21, 4  ;;  %s738_s23 = smov 128   ;;  %s21_s22 = int_to_ptr.vmem [resolvable:$true] %s20_s22 }
   0x3   :  { %s739_s24 = smov 8  }
   0x4   :  { %26 = dma.hbm_to_vmem [thread:$0]  %s19_s20, 3456, %s21_s22, [#allocation3], %s738_s23, %s738_s23, %s739_s24  }
   0x5   :  { %733 = dma.done.wait [#allocation3], 3456  }
   0x6   :  { %734 = vsyncadd [#allocation3], 4294963840  ;;  %v161_v0 = vld [vmem:[#allocation2 + $0xd0] sm:$0xff]  ;;  %v160_v1 = vld [vmem:[#allocation2 + $0xc8] sm:$0xff]  ;;  %vm65_vm0 = vcmask 588800   ;;  %v215_v39 = vlaneseq  ;;  %v740_v48 = vmov 1.0  }
   0x7   :  { %v64_v2 = vld [vmem:[#allocation2 + $0x88] sm:$0xff]  ;;  %181 = vmatpush.msra.mxu2 %v161_v0  ;;  %v50_v3 = vld [vmem:[#allocation2 + $0x40] sm:$0xff]  ;;  %v49_v6 = vld [vmem:[#allocation2 + $0x38] sm:$0xff]  ;;  %s597_s6 = sshll.u32 %s914_s5, 4  ;;  %s598_s6 = int_to_ptr.hbm [resolvable:$true] %s597_s6 }
   0x8   :  { %85 = vmatpush.msra.mxu0 %v64_v2  ;;  %v63_v4 = vld [vmem:[#allocation2 + $0x80] sm:$0xff]  ;;  %126 = vmatpush.msra.mxu1 %v50_v3  ;;  %v62_v7 = vld [vmem:[#allocation2 + $0x78] sm:$0xff]  ;;  %v48_v8 = vld [vmem:[#allocation2 + $0x30] sm:$0xff]  ;;  %v826_v40 = vshrl.u32 %v215_v39, 7  ;;  %v425_v42 = vand.u32 127, %v215_v39 }
   0x9   :  { %v159_v5 = vld [vmem:[#allocation2 + $0xc0] sm:$0xff]  ;;  %182 = vmatpush.msra.mxu2 %v160_v1  ;;  %v158_v9 = vld [vmem:[#allocation2 + $0xb8] sm:$0xff]  ;;  %v61_v10 = vld [vmem:[#allocation2 + $0x70] sm:$0xff] }
   0xa   :  { %86 = vmatpush.msra.mxu0 %v63_v4  ;;  %127 = vmatpush.msra.mxu1 %v49_v6  ;;  %v47_v11 = vld [vmem:[#allocation2 + $0x28] sm:$0xff]  ;;  %v157_v12 = vld [vmem:[#allocation2 + $0xb0] sm:$0xff]  ;;  %v46_v14 = vld [vmem:[#allocation2 + $0x20] sm:$0xff]  ;;  %v231_v41 = vadd.s32 120, %v826_v40  ;;  %v829_v44 = vand.u32 7, %v425_v42  ;;  %v230_v45 = vadd.s32 112, %v826_v40 }
   0xb   :  { %183 = vmatpush.msra.mxu2 %v159_v5  ;;  %v60_v13 = vld [vmem:[#allocation2 + $0x68] sm:$0xff]  ;;  %v59_v16 = vld [vmem:[#allocation2 + $0x60] sm:$0xff]  ;;  %v45_v17 = vld [vmem:[#allocation2 + $0x18] sm:$0xff]  ;;  %v229_v47 = vadd.s32 104, %v826_v40  ;;  %v228_v50 = vadd.s32 96, %v826_v40  ;;  %v227_v52 = vadd.s32 88, %v826_v40 }
   0xc   :  { %87 = vmatpush.msra.mxu0 %v62_v7  ;;  %128 = vmatpush.msra.mxu1 %v48_v8  ;;  %v156_v15 = vld [vmem:[#allocation2 + $0xa8] sm:$0xff]  ;;  %v155_v18 = vld [vmem:[#allocation2 + $0xa0] sm:$0xff]  ;;  %v58_v19 = vld [vmem:[#allocation2 + $0x58] sm:$0xff]  ;;  %v341_v43 = vand.u32 7, %v231_v41  ;;  %v334_v46 = vand.u32 7, %v230_v45  ;;  %v226_v54 = vadd.s32 80, %v826_v40 }
   0xd   :  { %184 = vmatpush.msra.mxu2 %v158_v9  ;;  %v44_v20 = vld [vmem:[#allocation2 + $0x10] sm:$0xff]  ;;  %v154_v21 = vld [vmem:[#allocation2 + $0x98] sm:$0xff]  ;;  %v43_v23 = vld [vmem:[#allocation2 + $0x8] sm:$0xff]  ;;  %v327_v49 = vand.u32 7, %v229_v47  ;;  %v320_v51 = vand.u32 7, %v228_v50  ;;  %v313_v53 = vand.u32 7, %v227_v52 }
   0xe   :  { %88 = vmatpush.msra.mxu0 %v61_v10  ;;  %129 = vmatpush.msra.mxu1 %v47_v11  ;;  %v57_v22 = vld [vmem:[#allocation2 + $0x50] sm:$0xff]  ;;  %v56_v25 = vld [vmem:[#allocation2 + $0x48] sm:$0xff]  ;;  %v42_v27 = vld [vmem:[#allocation2] sm:$0xff]  ;;  %vm453_vm1 = vcmp.eq.s32.totalorder %v341_v43, %v829_v44  ;;  %vm452_vm2 = vcmp.eq.s32.totalorder %v334_v46, %v829_v44  ;;  %v306_v55 = vand.u32 7, %v226_v54  ;;  %v225_v56 = vadd.s32 72, %v826_v40 }
   0xf   :  { %185 = vmatpush.msra.mxu2 %v157_v12  ;;  %v153_v24 = vld [vmem:[#allocation2 + $0x90] sm:$0xff]  ;;  %v148_v26 = vld [vmem:[%s909_s0 + $0x2] sm:$0xff]  ;;  %v622_v33 = vld [vmem:[%s909_s0 + $0x1a] sm:$0xff]  ;;  %644 = vmatpush.msk.msra.mxu3 %vm453_vm1, %v740_v48  ;;  %vm451_vm3 = vcmp.eq.s32.totalorder %v327_v49, %v829_v44  ;;  %vm450_vm4 = vcmp.eq.s32.totalorder %v320_v51, %v829_v44  ;;  %vm449_vm5 = vcmp.eq.s32.totalorder %v313_v53, %v829_v44  ;;  %v224_v58 = vadd.s32 64, %v826_v40 }
  0x10   :  { %89 = vmatpush.msra.mxu0 %v60_v13  ;;  %130 = vmatpush.msra.mxu1 %v46_v14  ;;  %v51_v28 = vld [vmem:[%s909_s0 + $0x1] sm:$0xff]  ;;  %v149_v30 = vld [vmem:[%s909_s0 + $0xa] sm:$0xff]  ;;  %v612_v34 = vld [vmem:[%s909_s0 + $0x19] sm:$0xff]  ;;  %vm448_vm6 = vcmp.eq.s32.totalorder %v306_v55, %v829_v44  ;;  %v299_v57 = vand.u32 7, %v225_v56  ;;  %v223_v60 = vadd.s32 56, %v826_v40  ;;  %v222_v62 = vadd.s32 48, %v826_v40 }
  0x11   :  { %186 = vmatpush.msra.mxu2 %v156_v15  ;;  %v37_v29 = vld [vmem:[%s909_s0] sm:$0xff]  ;;  %v52_v31 = vld [vmem:[%s909_s0 + $0x9] sm:$0xff]  ;;  %v610_v35 = vld [vmem:[%s909_s0 + $0x18] sm:$0xff]  ;;  %645 = vmatpush.msk.msra.mxu3 %vm452_vm2, %v740_v48  ;;  %v292_v59 = vand.u32 7, %v224_v58  ;;  %v221_v2 = vadd.s32 40, %v826_v40  ;;  %v220_v4 = vadd.s32 32, %v826_v40 }
  0x12   :  { %90 = vmatpush.msra.mxu0 %v59_v16  ;;  %131 = vmatpush.msra.mxu1 %v45_v17  ;;  %v38_v32 = vld [vmem:[%s909_s0 + $0x8] sm:$0xff]  ;;  %v611_v38 = vld [vmem:[%s909_s0 + $0x20] sm:$0xff]  ;;  %vm447_vm7 = vcmp.eq.s32.totalorder %v299_v57, %v829_v44  ;;  %v285_v61 = vand.u32 7, %v223_v60  ;;  %v278_v1 = vand.u32 7, %v222_v62  ;;  %v219_v6 = vadd.s32 24, %v826_v40 }
  0x13   :  { %187 = vmatpush.msra.mxu2 %v155_v18  ;;  %v623_v36 = vld [vmem:[%s909_s0 + $0x22] sm:$0xff]  ;;  %646 = vmatpush.msk.msra.mxu3 %vm451_vm3, %v740_v48  ;;  %vm446_vm8 = vcmp.eq.s32.totalorder %v292_v59, %v829_v44  ;;  %v271_v3 = vand.u32 7, %v221_v2  ;;  %v264_v5 = vand.u32 7, %v220_v4  ;;  %v218_v7 = vadd.s32 16, %v826_v40 }
  0x14   :  { %91 = vmatpush.msra.mxu0 %v58_v19  ;;  %132 = vmatpush.msra.mxu1 %v44_v20  ;;  %v613_v37 = vld [vmem:[%s909_s0 + $0x21] sm:$0xff]  ;;  %vm445_vm9 = vcmp.eq.s32.totalorder %v285_v61, %v829_v44  ;;  %vm444_vm10 = vcmp.eq.s32.totalorder %v278_v1, %v829_v44  ;;  %v217_v9 = vadd.s32 8, %v826_v40  ;;  %v257_v10 = vand.u32 7, %v219_v6 }
  0x15   :  { %188 = vmatpush.msra.mxu2 %v154_v21  ;;  %647 = vmatpush.msk.msra.mxu3 %vm450_vm4, %v740_v48  ;;  %vm443_vm11 = vcmp.eq.s32.totalorder %v271_v3, %v829_v44  ;;  %vm442_vm12 = vcmp.eq.s32.totalorder %v264_v5, %v829_v44  ;;  %v250_v11 = vand.u32 7, %v218_v7  ;;  %v236_v15 = vand.u32 7, %v826_v40 }
  0x16   :  { %92 = vmatpush.msra.mxu0 %v57_v22  ;;  %133 = vmatpush.msra.mxu1 %v43_v23  ;;  %v243_v12 = vand.u32 7, %v217_v9  ;;  %vm441_vm13 = vcmp.eq.s32.totalorder %v257_v10, %v829_v44  ;;  %v555_v9 = vld [vmem:[%s912_s3] sm:$0x1]  ;;  %s741_s3 = smov [#allocation5]  }
  0x17   :  { %189 = vmatpush.msra.mxu2 %v153_v24  ;;  %648 = vmatpush.msk.msra.mxu3 %vm449_vm5, %v740_v48  ;;  %vm440_vm14 = vcmp.eq.s32.totalorder %v250_v11, %v829_v44  ;;  %s595_s28 = sshll.u32 %s741_s3, 4  ;;  %s596_s28 = int_to_ptr.vmem [resolvable:$true] %s595_s28 }
  0x18   :  { %93 = vmatpush.msra.mxu0 %v56_v25  ;;  %624 = vmatmul.msk.f32.vlgmr.msra.gmra.mxu2 %vm65_vm0, %v148_v26  ;;  %vm439_vm15 = vcmp.eq.s32.totalorder %v243_v12, %v829_v44  ;;  %v681_v25 = vld [vmem:[%s911_s2] ss:$0 sm:$0xff] }
  0x19   :  { %134 = vmatpush.msra.mxu1 %v42_v27  ;;  %614 = vmatmul.msk.f32.vlgmr.msra.gmra.mxu0 %vm65_vm0, %v51_v28 }
  0x1a   :  { %618 = vmatmul.msk.f32.vlgmr.msra.gmra.mxu1 %vm65_vm0, %v37_v29  ;;  %660 = vmatpush.msk.msrb.mxu0 %vm453_vm1, %v740_v48 }
  0x1b   :  { %649 = vmatpush.msk.msra.mxu3 %vm448_vm6, %v740_v48 }
  0x1c   :  { %661 = vmatpush.msk.msrb.mxu0 %vm452_vm2, %v740_v48 }
  0x1d   :  { %650 = vmatpush.msk.msra.mxu3 %vm447_vm7, %v740_v48 }
  0x1e   :  { %662 = vmatpush.msk.msrb.mxu0 %vm451_vm3, %v740_v48 }
  0x1f   :  { %651 = vmatpush.msk.msra.mxu3 %vm446_vm8, %v740_v48 }
  0x20   :  { %625 = vmatmul.msk.f32.gmra.mxu2 %vm65_vm0, %v149_v30  ;;  %663 = vmatpush.msk.msrb.mxu0 %vm450_vm4, %v740_v48 }
  0x21   :  { %615 = vmatmul.msk.f32.gmra.mxu0 %vm65_vm0, %v52_v31  ;;  %652 = vmatpush.msk.msra.mxu3 %vm445_vm9, %v740_v48 }
  0x22   :  { %619 = vmatmul.msk.f32.gmra.mxu1 %vm65_vm0, %v38_v32  ;;  %664 = vmatpush.msk.msrb.mxu0 %vm449_vm5, %v740_v48 }
  0x23   :  { %653 = vmatpush.msk.msra.mxu3 %vm444_vm10, %v740_v48 }
  0x24   :  { %665 = vmatpush.msk.msrb.mxu0 %vm448_vm6, %v740_v48 }
  0x25   :  { %654 = vmatpush.msk.msra.mxu3 %vm443_vm11, %v740_v48 }
  0x26   :  { %666 = vmatpush.msk.msrb.mxu0 %vm447_vm7, %v740_v48 }
  0x27   :  { %655 = vmatpush.msk.msra.mxu3 %vm442_vm12, %v740_v48 }
  0x28   :  { %626 = vmatmul.msk.f32.gmra.mxu2 %vm65_vm0, %v622_v33  ;;  %667 = vmatpush.msk.msrb.mxu0 %vm446_vm8, %v740_v48 }
  0x29   :  { %616 = vmatmul.msk.f32.gmra.mxu0 %vm65_vm0, %v612_v34  ;;  %656 = vmatpush.msk.msra.mxu3 %vm441_vm13, %v740_v48 }
  0x2a   :  { %620 = vmatmul.msk.f32.gmra.mxu1 %vm65_vm0, %v610_v35  ;;  %668 = vmatpush.msk.msrb.mxu0 %vm445_vm9, %v740_v48 }
  0x2b   :  { %657 = vmatpush.msk.msra.mxu3 %vm440_vm14, %v740_v48 }
  0x2c   :  { %669 = vmatpush.msk.msrb.mxu0 %vm444_vm10, %v740_v48 }
  0x2d   :  { %658 = vmatpush.msk.msra.mxu3 %vm439_vm15, %v740_v48 }
  0x2e   :  { %670 = vmatpush.msk.msrb.mxu0 %vm443_vm11, %v740_v48 }
  0x30   :  { %627 = vmatmul.msk.f32.gmra.mxu2 %vm65_vm0, %v623_v36  ;;  %671 = vmatpush.msk.msrb.mxu0 %vm442_vm12, %v740_v48 }
  0x31   :  { %617 = vmatmul.msk.f32.gmra.mxu0 %vm65_vm0, %v613_v37 }
  0x32   :  { %621 = vmatmul.msk.f32.gmra.mxu1 %vm65_vm0, %v611_v38  ;;  %672 = vmatpush.msk.msrb.mxu0 %vm441_vm13, %v740_v48  ;;  %vm438_vm0 = vcmp.eq.s32.totalorder %v236_v15, %v829_v44 }
  0x33   :  { %659 = vmatpush.msk.msra.mxu3 %vm438_vm0, %v740_v48 }
  0x34   :  { %673 = vmatpush.msk.msrb.mxu0 %vm440_vm14, %v740_v48 }
  0x36   :  { %674 = vmatpush.msk.msrb.mxu0 %vm439_vm15, %v740_v48 }
  0x38   :  { %675 = vmatpush.msk.msrb.mxu0 %vm438_vm0, %v740_v48 }
  0x96   :  { %v95_v63 = vpop.f32.mrf.mxu0 }
  0x97   :  { %v136_v0 = vpop.f32.mrf.mxu1 }
  0x98   :  { %v137_v20 = vadd.f32 %v136_v0, %v95_v63 }
  0x9b   :  { %v191_v8 = vpop.f32.mrf.mxu2 }
  0x9c   :  { %v203_v24 = vadd.f32 %v191_v8, %v137_v20 }
  0x9e   :  { %v98_v13 = vpop.f32.mrf.mxu0  ;;  %v211_v31 = vadd.f32 %v681_v25, %v203_v24 }
  0x9f   :  { %v139_v14 = vpop.f32.mrf.mxu1 }
  0xa0   :  { %v140_v19 = vadd.f32 %v139_v14, %v98_v13  ;;  %v682_v14 = vld [vmem:[%s913_s4] ss:$0 sm:$0xff] }
  0xa3   :  { %v194_v16 = vpop.f32.mrf.mxu2 }
  0xa4   :  { %v204_v23 = vadd.f32 %v194_v16, %v140_v19 }
  0xa6   :  { %v101_v17 = vpop.f32.mrf.mxu0  ;;  %v212_v29 = vadd.f32 %v681_v25, %v204_v23 }
  0xa7   :  { %v142_v18 = vpop.f32.mrf.mxu1 }
  0xa8   :  { %v143_v21 = vadd.f32 %v142_v18, %v101_v17  ;;  %v486_v34 = vadd.f32 %v212_v29, %v211_v31 }
  0xab   :  { %v197_v22 = vpop.f32.mrf.mxu2 }
  0xac   :  { %v205_v26 = vadd.f32 %v197_v22, %v143_v21 }
  0xae   :  { %v104_v27 = vpop.f32.mrf.mxu0  ;;  %v213_v32 = vadd.f32 %v681_v25, %v205_v26 }
  0xaf   :  { %v145_v28 = vpop.f32.mrf.mxu1 }
  0xb0   :  { %v146_v30 = vadd.f32 %v145_v28, %v104_v27  ;;  %v487_v36 = vadd.f32 %v486_v34, %v213_v32 }
  0xb3   :  { %v200_v33 = vpop.f32.mrf.mxu2 }
  0xb4   :  { %v206_v35 = vadd.f32 %v200_v33, %v146_v30 }
  0xb6   :  { %v214_v37 = vadd.f32 %v681_v25, %v206_v35 }
  0xb8   :  { %v488_v38 = vadd.f32 %v487_v36, %v214_v37 }
  0xba   :  { %v489_v39 = vrot.slane %v488_v38, 4 }
  0xbc   :  { %v490_v40 = vadd.f32 %v489_v39, %v488_v38 }
  0xbe   :  { %v491_v41 = vrot.slane %v490_v40, 2 }
  0xc0   :  { %v492_v42 = vadd.f32 %v491_v41, %v490_v40 }
  0xc2   :  { %v493_v43 = vrot.slane %v492_v42, 1 }
  0xc4   :  { %v494_v44 = vadd.f32 %v493_v43, %v492_v42 }
  0xc6   :  { %511 = vmatmul.f32.vlgmr.msra.gmra.mxu3 %v494_v44 }
 0x149   :  { %v512_v45 = vpop.f32.mrf.mxu3 }
 0x14a   :  { %v515_v46 = vmul.f32 0.001953125, %v512_v45 }
 0x14c   :  { %v516_v47 = vperm.slane %v515_v46, 0 }
 0x14e   :  { %v517_v48 = vsub.f32 %v211_v31, %v516_v47  ;;  %v518_v49 = vsub.f32 %v212_v29, %v516_v47  ;;  %v519_v50 = vsub.f32 %v213_v32, %v516_v47  ;;  %v520_v51 = vsub.f32 %v214_v37, %v516_v47 }
 0x150   :  { %v521_v52 = vmul.f32 %v517_v48, %v517_v48  ;;  %v522_v53 = vmul.f32 %v518_v49, %v518_v49  ;;  %v523_v54 = vmul.f32 %v519_v50, %v519_v50  ;;  %v524_v56 = vmul.f32 %v520_v51, %v520_v51 }
 0x152   :  { %v525_v55 = vadd.f32 %v522_v53, %v521_v52 }
 0x154   :  { %v526_v57 = vadd.f32 %v525_v55, %v523_v54 }
 0x156   :  { %v527_v58 = vadd.f32 %v526_v57, %v524_v56 }
 0x158   :  { %v528_v59 = vrot.slane %v527_v58, 4 }
 0x15a   :  { %v529_v60 = vadd.f32 %v528_v59, %v527_v58 }
 0x15c   :  { %v530_v61 = vrot.slane %v529_v60, 2 }
 0x15e   :  { %v531_v62 = vadd.f32 %v530_v61, %v529_v60 }
 0x160   :  { %v532_v63 = vrot.slane %v531_v62, 1 }
 0x162   :  { %v533_v0 = vadd.f32 %v532_v63, %v531_v62 }
 0x164   :  { %550 = vmatmul.f32.vlgmr.msrb.gmra.mxu0 %v533_v0 }
 0x1e1   :  { %v551_v1 = vpop.f32.mrf.mxu0 }
 0x1e2   :  { %v554_v2 = vmul.f32 0.001953125, %v551_v1 }
 0x1e4   :  { %v556_v3 = vadd.f32 1e-05, %v554_v2 }
 0x1e6   :  { %683 = vrsqrt.f32 %v556_v3  ;;  %vm563_vm2 = vweird.f32 %v556_v3 }
 0x1ec   :  { %v684_v4 = vpop.eup %683 }
 0x1ed   :  { %v558_v5 = vmul.f32 %v684_v4, %v556_v3  ;;  %vm564_vm1 = vweird.f32 %v684_v4 }
 0x1ee   :  { %vm565_vm3 = vmor %vm563_vm2, %vm564_vm1 }
 0x1ef   :  { %v559_v6 = vmul.f32 %v684_v4, %v558_v5 }
 0x1f1   :  { %v560_v7 = vmul.f32 0.5, %v559_v6 }
 0x1f3   :  { %v561_v8 = vsub.f32 1.5, %v560_v7 }
 0x1f5   :  { %v562_v10 = vmul.f32 %v684_v4, %v561_v8 }
 0x1f7   :  { %v566_v11 = vsel %vm565_vm3, %v684_v4, %v562_v10 }
 0x1f8   :  { %v567_v12 = vmul.f32 %v566_v11, %v555_v9 }
 0x1fa   :  { %v569_v13 = vperm.slane %v567_v12, 0 }
 0x1fc   :  { %v571_v15 = vmul.f32 %v569_v13, %v517_v48  ;;  %v572_v16 = vmul.f32 %v569_v13, %v518_v49  ;;  %v573_v17 = vmul.f32 %v569_v13, %v519_v50  ;;  %v574_v18 = vmul.f32 %v569_v13, %v520_v51 }
 0x1fe   :  { %v579_v19 = vadd.f32 %v682_v14, %v571_v15  ;;  %v580_v20 = vadd.f32 %v682_v14, %v572_v16  ;;  %v581_v21 = vadd.f32 %v682_v14, %v573_v17  ;;  %v582_v22 = vadd.f32 %v682_v14, %v574_v18 }
 0x200   :  { %v583_v23 = vmax.f32 %v579_v19, 0.0  ;;  %v584_v24 = vmax.f32 %v580_v20, 0.0  ;;  %v585_v25 = vmax.f32 %v581_v21, 0.0  ;;  %v586_v26 = vmax.f32 %v582_v22, 0.0 }
 0x202   :  { %587 = vst [vmem:[#allocation5] sm:$0xff] %v583_v23 }
 0x203   :  { %588 = vst [vmem:[#allocation5 + $0x8] sm:$0xff] %v584_v24 }
 0x204   :  { %589 = vst [vmem:[#allocation5 + $0x10] sm:$0xff] %v585_v25 }
 0x205   :  { %590 = vst [vmem:[#allocation5 + $0x18] sm:$0xff] %v586_v26 }
 0x206   :  { %603 = dma.vmem_to_hbm [thread:$0]  %s596_s28, 512, %s598_s6, [#allocation4], %s738_s23, %s738_s23, %s739_s24  }
 0x207   :  { %735 = dma.done.wait [#allocation4], 512  }
 0x208   :  { %736 = vsyncadd [#allocation4], 4294966784 }
 0x209   :  { %608 = vsyncpa [#allocation3], 1 }
 0x20a   :  { %609 = vsyncpa [#allocation4], 1 }

</bundles_post_ra>
